<compile_context>
chip_gen: v7x
topology: tpu7x:2x2x1
jax: 0.10.0
libtpu: 0.0.40
codegen_flags: <defaults>
</compile_context>

<pallas_src>
import jax
import jax.numpy as jnp
import numpy as np
from jax.experimental import pallas as pl
from jax.experimental.pallas import tpu as pltpu


def _make_rgnn_kernel(nlayers: int, n_edge_labels: int, n_nodes: int, nhid: int,
                      bps: int, n_graphs: int, out_feat: int):
    """Fused RGNN forward kernel; one grid step processes `bps` batch elements."""
    f32 = jnp.float32
    bf16 = jnp.bfloat16
    L, N = n_edge_labels, n_nodes
    BN = bps * N

    def rgnn_kernel(x_ref, adj_ref, pool_ref,
                    w_emb_ref, w_cat_ref, b_cat_ref,
                    w1_ref, w2_ref, b_mlp_ref,
                    out_ref,
                    msg_ref):
        # int8 adjacency -> bf16 ONCE, reused by every layer (exact: small ints).
        adj_bf = adj_ref[...].astype(bf16)                          # [bps, N, L*N]

        # --- node embedding (bias folded via the ones column), all bps batches stacked ---
        h = jnp.dot(x_ref[...], w_emb_ref[...],
                    preferred_element_type=f32).astype(bf16)        # [bps*N, nhid]
        h_f32 = h.astype(f32)

        # --- RGNN layers ---
        for l in range(nlayers):
            # One lane-dense 128-wide matmul over ALL bps*N rows:
            # columns = [root | conv_0 | ... | conv_{L-1}]
            hw = jnp.dot(h, w_cat_ref[l],
                         preferred_element_type=f32) + b_cat_ref[l]  # [bps*N, (1+L)*nhid] f32
            h_root = hw[:, :nhid]                                    # [bps*N, nhid] f32
            msg_all = hw[:, nhid:].astype(bf16)                      # ONE cast: [bps*N, L*nhid]

            # Stack per-(batch, label) messages label-major: msg_ref[b, e*N + s, :]
            for b in range(bps):
                for e in range(L):
                    msg_ref[b, e * N:(e + 1) * N, :] = (
                        msg_all[b * N:(b + 1) * N, e * nhid:(e + 1) * nhid])

            # Per-batch big-K aggregation: [N, L*N] @ [L*N, nhid] for each element.
            h_agg = jnp.einsum('bds,bsc->bdc', adj_bf, msg_ref[...],
                               preferred_element_type=f32)           # [bps, N, nhid]

            t = h_root + h_agg.reshape(BN, nhid)
            t = jnp.maximum(t, 0.01 * t)                             # F.leaky_relu (slope 0.01)
            h = t.astype(bf16)
            h_f32 = t

        # --- global mean pool via the block-diagonal f32 pool matrix (exact 1/count),
        #     then MLP, all as flat [bps*G, .] row-stacked matmuls ---
        g = jnp.dot(pool_ref[...], h_f32,
                    preferred_element_type=f32).astype(bf16)         # [bps*G, nhid]
        b1 = b_mlp_ref[:, :nhid]
        b2 = b_mlp_ref[:, nhid:nhid + out_feat]
        m = jnp.maximum(jnp.dot(g, w1_ref[...], preferred_element_type=f32) + b1,
                        0.0).astype(bf16)
        out_ref[...] = jnp.dot(m, w2_ref[...], preferred_element_type=f32) + b2

    return rgnn_kernel


def rgnn_forward(x, adj, pool_mat, params, *, nlayers, n_edge_labels, num_steps=2):
    """Batched RGNN forward.

    x        : [B, N, in_feat]      node features (B independent mega-graphs)
    adj      : [B, L, N, N]         dense per-label adjacency, adj[b,l,dst,src]
    pool_mat : [B, G, N]            mean-pool matrix per batch element
    returns  : [B, G]               (torch h.squeeze(1), stacked over B)
    """
    (w_emb, b_emb, wr, br, wc, w1, b1, w2, b2) = params
    B, N, in_feat = x.shape
    G = pool_mat.shape[1]
    nhid = w_emb.shape[1]
    out_feat = w2.shape[1]
    L = n_edge_labels
    f32, bf16 = jnp.float32, jnp.bfloat16

    # Fat grid steps: 2 by default so v7x's two TensorCores each get one step.
    num_steps = max(1, min(num_steps, B))
    while B % num_steps:
        num_steps -= 1
    bps = B // num_steps
    assert (bps * N) % 8 == 0, "need bps*N divisible by 8 for sublane-aligned blocks"

    # ---------- wrapper-side layout plumbing (keep reshapes out of the kernel) ----------
    # Embedding bias folded via an appended ones-column; batches row-stacked.
    x_aug = jnp.concatenate([x, jnp.ones((B, N, 1), f32)], axis=-1)
    x_flat = x_aug.reshape(B * N, in_feat + 1).astype(bf16)                # [B*N, in_feat+1]
    w_emb_aug = jnp.concatenate([w_emb, b_emb], axis=0).astype(bf16)       # [in_feat+1, nhid]

    # Fuse root + conv weights into one 128-lane weight per layer.
    w_cat = jnp.concatenate([wr] + [wc[:, e] for e in range(L)],
                            axis=-1).astype(bf16)                          # [nlayers, nhid, (1+L)*nhid]
    b_cat = jnp.concatenate([br, jnp.zeros((nlayers, 1, L * nhid), f32)],
                            axis=-1)                                       # f32, root bias only

    # Adjacency as [B, N(dst), L*N] with column = label*N + src (label-major), stored int8.
    adj_cat = jnp.transpose(adj, (0, 2, 1, 3)).reshape(B, N, L * N)
    adj_i8 = adj_cat.astype(jnp.int8)        # exact: multiplicities are small ints (|.| < 127)

    # Mean-pool matrix, block-diagonal per grid step, kept f32 (exact 1/count).
    pool_bd = jnp.zeros((num_steps, bps * G, bps * N), f32)
    for s in range(num_steps):
        for bl in range(bps):
            pool_bd = pool_bd.at[s, bl * G:(bl + 1) * G, bl * N:(bl + 1) * N].set(
                pool_mat[s * bps + bl])

    w1_b = w1.astype(bf16)
    w2_b = w2.astype(bf16)
    b_mlp = jnp.concatenate([b1, b2], axis=-1).astype(f32)                 # [1, nhid+out_feat]

    kernel = _make_rgnn_kernel(nlayers, L, N, nhid, bps, G, out_feat)

    def full(a):  # whole-array VMEM-resident block (weights, shared across steps)
        return pl.BlockSpec(a.shape, lambda s, _nd=a.ndim: (0,) * _nd)

    grid_spec = pltpu.PrefetchScalarGridSpec(
        num_scalar_prefetch=0,
        grid=(num_steps,),
        in_specs=[
            pl.BlockSpec((bps * N, in_feat + 1), lambda s: (s, 0)),        # x_flat
            pl.BlockSpec((bps, N, L * N), lambda s: (s, 0, 0)),            # adj_i8
            pl.BlockSpec((None, bps * G, bps * N), lambda s: (s, 0, 0)),   # pool_bd
            full(w_emb_aug), full(w_cat), full(b_cat),
            full(w1_b), full(w2_b), full(b_mlp),
        ],
        out_specs=pl.BlockSpec((None, bps * G, out_feat), lambda s: (s, 0, 0)),
        scratch_shapes=[pltpu.VMEM((bps, L * N, nhid), bf16)],             # message stack
    )

    out = pl.pallas_call(
        kernel,
        out_shape=jax.ShapeDtypeStruct((num_steps, bps * G, out_feat), f32),
        grid_spec=grid_spec,
        compiler_params=pltpu.CompilerParams(
            dimension_semantics=("parallel",),     # v7x dual-TC: one fat step per core
            vmem_limit_bytes=32 * 1024 * 1024,     # plenty at demo size; re-derive + dst/K-tile for large N
        ),
    )(x_flat, adj_i8, pool_bd, w_emb_aug, w_cat, b_cat, w1_b, w2_b, b_mlp)

    # [num_steps, bps*G, out_feat] -> [B, G]  (torch: h = h.squeeze(1), out_feat == 1)
    return out.reshape(B, G, out_feat)[:, :, 0]


# --------------------------- references ---------------------------

def _reference_fp32(x, adj, pool_mat, params, *, nlayers, n_edge_labels):
    """Pure-f32 reference mirroring the torch forward exactly (per batch element)."""
    (w_emb, b_emb, wr, br, wc, w1, b1, w2, b2) = params
    outs = []
    for bi in range(x.shape[0]):
        h = x[bi] @ w_emb + b_emb
        for l in range(nlayers):
            h_out = h @ wr[l] + br[l]
            for e in range(n_edge_labels):
                h_out = h_out + adj[bi, e] @ (h @ wc[l, e])
            h = jnp.where(h_out > 0, h_out, 0.01 * h_out)
        g = pool_mat[bi] @ h
        m = jnp.maximum(g @ w1 + b1, 0.0)
        outs.append(m @ w2 + b2)
    return jnp.stack(outs)[:, :, 0]


def _reference_mixed(x, adj, pool_mat, params, *, nlayers, n_edge_labels):
    """Unfused reference mirroring the kernel's bf16-input / f32-accumulate precision."""
    (w_emb, b_emb, wr, br, wc, w1, b1, w2, b2) = params
    f32, bf16 = jnp.float32, jnp.bfloat16
    dotb = lambda a, b: jnp.dot(a.astype(bf16), b.astype(bf16), preferred_element_type=f32)
    outs = []
    for bi in range(x.shape[0]):
        h = (dotb(x[bi], w_emb) + b_emb.astype(bf16).astype(f32)).astype(bf16)
        h_f32 = h.astype(f32)
        for l in range(nlayers):
            t = dotb(h, wr[l]) + br[l]
            for e in range(n_edge_labels):
                msg = dotb(h, wc[l, e]).astype(bf16)
                t = t + dotb(adj[bi, e], msg)
            t = jnp.maximum(t, 0.01 * t)
            h = t.astype(bf16)
            h_f32 = t
        g = (pool_mat[bi] @ h_f32).astype(bf16)          # pool weights kept f32 in the kernel
        m = jnp.maximum(dotb(g, w1) + b1, 0.0).astype(bf16)
        outs.append(dotb(m, w2) + b2)
    return jnp.stack(outs)[:, :, 0]


if __name__ == "__main__":
    # ---- hyper-params of the torch module ----
    IN_FEAT, NHID, OUT_FEAT = 8, 32, 1
    N_EDGE_LABELS, NLAYERS = 3, 2            # aggr='add', pool='mean'

    # ---- batched graph sizes ----
    B = 4                 # independent graph-batches; processed in 2 fat grid steps of 2
    N_NODES = 16
    N_GRAPHS = 2
    N_EDGES_PER_LABEL = 24

    key = jax.random.PRNGKey(0)
    k_x, k_adj, k_par = jax.random.split(key, 3)

    # ---- node features ----
    x = jax.random.normal(k_x, (B, N_NODES, IN_FEAT), dtype=jnp.float32)

    # ---- edge indices per (batch, label) -> dense adjacency adj[b, l, dst, src] ----
    adj = jnp.zeros((B, N_EDGE_LABELS, N_NODES, N_NODES), dtype=jnp.float32)
    ekeys = jax.random.split(k_adj, B * N_EDGE_LABELS * 2)
    ki = 0
    for b in range(B):
        for l in range(N_EDGE_LABELS):
            src = jax.random.randint(ekeys[ki], (N_EDGES_PER_LABEL,), 0, N_NODES); ki += 1
            dst = jax.random.randint(ekeys[ki], (N_EDGES_PER_LABEL,), 0, N_NODES); ki += 1
            adj = adj.at[b, l, dst, src].add(1.0)

    # int8 / bf16 exactness guard for edge multiplicities.
    assert float(np.asarray(jnp.max(adj))) < 127.0, "edge multiplicities must fit int8"

    # ---- batch assignment -> mean-pool matrix [B, G, N] ----
    batch_vec = jnp.concatenate([jnp.zeros(N_NODES // 2, jnp.int32),
                                 jnp.ones(N_NODES - N_NODES // 2, jnp.int32)])
    one_hot = (batch_vec[None, :] == jnp.arange(N_GRAPHS)[:, None]).astype(jnp.float32)
    counts = jnp.maximum(one_hot.sum(axis=1, keepdims=True), 1.0)
    pool_mat = jnp.broadcast_to(one_hot / counts, (B, N_GRAPHS, N_NODES))   # global_mean_pool

    # ---- deterministic parameter init (weights stored as [in, out]) ----
    def winit(k, shape, scale=0.1):
        return (scale * jax.random.normal(k, shape)).astype(jnp.float32)

    pkeys = jax.random.split(k_par, 10)
    w_emb = winit(pkeys[0], (IN_FEAT, NHID))
    b_emb = winit(pkeys[1], (1, NHID))
    wr = winit(pkeys[2], (NLAYERS, NHID, NHID))                      # root linears
    br = winit(pkeys[3], (NLAYERS, 1, NHID))
    wc = winit(pkeys[4], (NLAYERS, N_EDGE_LABELS, NHID, NHID))       # conv linears (no bias)
    w1 = winit(pkeys[5], (NHID, NHID))                               # mlp_h layer 1
    b1 = winit(pkeys[6], (1, NHID))
    w2 = winit(pkeys[7], (NHID, OUT_FEAT))                           # mlp_h layer 2
    b2 = winit(pkeys[8], (1, OUT_FEAT))
    params = (w_emb, b_emb, wr, br, wc, w1, b1, w2, b2)

    # ---- run kernel ----
    out = rgnn_forward(x, adj, pool_mat, params,
                       nlayers=NLAYERS, n_edge_labels=N_EDGE_LABELS, num_steps=2)
    out = jax.block_until_ready(out)

    # ---- correctness checks ----
    # 1) against an UNFUSED reference at the kernel's mixed precision
    #    (validates the weight-fusion / big-K aggregation / batching restructuring).
    ref_mixed = _reference_mixed(x, adj, pool_mat, params,
                                 nlayers=NLAYERS, n_edge_labels=N_EDGE_LABELS)
    np.testing.assert_allclose(np.asarray(out), np.asarray(ref_mixed),
                               rtol=5e-3, atol=5e-3)
    # 2) against the pure-f32 torch-semantics reference (looser: bf16 operands).
    ref_f32 = _reference_fp32(x, adj, pool_mat, params,
                              nlayers=NLAYERS, n_edge_labels=N_EDGE_LABELS)
    np.testing.assert_allclose(np.asarray(out), np.asarray(ref_f32),
                               rtol=1e-1, atol=5e-2)

    print("KERNEL_OK")
</pallas_src>

<mosaic_0001>
module attributes {stable_mosaic.version = 11 : i64} {
  func.func @rgnn_kernel(%arg0: i32, %arg1: memref<32x9xbf16, #tpu.memory_space<vmem>>, %arg2: memref<2x16x48xi8, #tpu.memory_space<vmem>>, %arg3: memref<1x4x32xf32, #tpu.memory_space<vmem>>, %arg4: memref<9x32xbf16, #tpu.memory_space<vmem>>, %arg5: memref<2x32x128xbf16, #tpu.memory_space<vmem>>, %arg6: memref<2x1x128xf32, #tpu.memory_space<vmem>>, %arg7: memref<32x32xbf16, #tpu.memory_space<vmem>>, %arg8: memref<32x1xbf16, #tpu.memory_space<vmem>>, %arg9: memref<1x33xf32, #tpu.memory_space<vmem>>, %arg10: memref<1x4x1xf32, #tpu.memory_space<vmem>>, %arg11: memref<2x48x32xbf16, #tpu.memory_space<vmem>>) attributes {dimension_semantics = [#tpu.dimension_semantics<parallel>], iteration_bounds = array<i64: 2>, scalar_prefetch = 0 : i64, scratch_operands = 1 : i64, tpu.core_type = #tpu.core_type<tc>, window_params = [{transform_indices = @transform_0, window_bounds = array<i64: 32, 9>}, {transform_indices = @transform_1, window_bounds = array<i64: 2, 16, 48>}, {transform_indices = @transform_2, window_bounds = array<i64: 1, 4, 32>}, {pipeline_mode = #tpu.pipeline_mode<synchronous>, transform_indices = @transform_3, window_bounds = array<i64: 9, 32>}, {pipeline_mode = #tpu.pipeline_mode<synchronous>, transform_indices = @transform_4, window_bounds = array<i64: 2, 32, 128>}, {pipeline_mode = #tpu.pipeline_mode<synchronous>, transform_indices = @transform_5, window_bounds = array<i64: 2, 1, 128>}, {pipeline_mode = #tpu.pipeline_mode<synchronous>, transform_indices = @transform_6, window_bounds = array<i64: 32, 32>}, {pipeline_mode = #tpu.pipeline_mode<synchronous>, transform_indices = @transform_7, window_bounds = array<i64: 32, 1>}, {pipeline_mode = #tpu.pipeline_mode<synchronous>, transform_indices = @transform_8, window_bounds = array<i64: 1, 33>}, {transform_indices = @transform_9, window_bounds = array<i64: 1, 4, 1>}]} {
    %c0 = arith.constant 0 : index
    %c0_0 = arith.constant 0 : index
    %c0_1 = arith.constant 0 : index
    %0 = vector.load %arg2[%c0, %c0_0, %c0_1] : memref<2x16x48xi8, #tpu.memory_space<vmem>>, vector<2x16x48xi8>
    %1 = arith.sitofp %0 : vector<2x16x48xi8> to vector<2x16x48xbf16>
    %c0_2 = arith.constant 0 : index
    %c0_3 = arith.constant 0 : index
    %2 = vector.load %arg1[%c0_2, %c0_3] : memref<32x9xbf16, #tpu.memory_space<vmem>>, vector<32x9xbf16>
    %c0_4 = arith.constant 0 : index
    %c0_5 = arith.constant 0 : index
    %3 = vector.load %arg4[%c0_4, %c0_5] : memref<9x32xbf16, #tpu.memory_space<vmem>>, vector<9x32xbf16>
    %cst = arith.constant dense<0.000000e+00> : vector<32x32xf32>
    %4 = tpu.matmul %2, %3, %cst {dimension_numbers = #tpu.dot_dimension_numbers<[1], [0], [0], [1], [0, 0, 1, 1], [], []>} : vector<32x9xbf16>, vector<9x32xbf16>, vector<32x32xf32> -> vector<32x32xf32>
    %5 = arith.truncf %4 : vector<32x32xf32> to vector<32x32xbf16>
    %c0_6 = arith.constant 0 : index
    %c0_7 = arith.constant 0 : index
    %c0_8 = arith.constant 0 : index
    %6 = vector.load %arg5[%c0_6, %c0_7, %c0_8] : memref<2x32x128xbf16, #tpu.memory_space<vmem>>, vector<1x32x128xbf16>
    %7 = vector.shape_cast %6 : vector<1x32x128xbf16> to vector<32x128xbf16>
    %cst_9 = arith.constant dense<0.000000e+00> : vector<32x128xf32>
    %8 = tpu.matmul %5, %7, %cst_9 {dimension_numbers = #tpu.dot_dimension_numbers<[1], [0], [0], [1], [0, 0, 1, 1], [], []>} : vector<32x32xbf16>, vector<32x128xbf16>, vector<32x128xf32> -> vector<32x128xf32>
    %c0_10 = arith.constant 0 : index
    %c0_11 = arith.constant 0 : index
    %c0_12 = arith.constant 0 : index
    %9 = vector.load %arg6[%c0_10, %c0_11, %c0_12] : memref<2x1x128xf32, #tpu.memory_space<vmem>>, vector<1x1x128xf32>
    %10 = vector.shape_cast %9 : vector<1x1x128xf32> to vector<1x128xf32>
    %11 = vector.broadcast %10 : vector<1x128xf32> to vector<32x128xf32>
    %12 = arith.addf %8, %11 : vector<32x128xf32>
    %13 = vector.extract_strided_slice %12 {offsets = [0, 0], sizes = [32, 32], strides = [1, 1]} : vector<32x128xf32> to vector<32x32xf32>
    %14 = vector.extract_strided_slice %12 {offsets = [0, 32], sizes = [32, 96], strides = [1, 1]} : vector<32x128xf32> to vector<32x96xf32>
    %15 = arith.truncf %14 : vector<32x96xf32> to vector<32x96xbf16>
    %16 = vector.extract_strided_slice %15 {offsets = [0, 0], sizes = [16, 32], strides = [1, 1]} : vector<32x96xbf16> to vector<16x32xbf16>
    %c0_13 = arith.constant 0 : index
    %c0_14 = arith.constant 0 : index
    %c0_15 = arith.constant 0 : index
    %17 = vector.load %arg11[%c0_13, %c0_14, %c0_15] : memref<2x48x32xbf16, #tpu.memory_space<vmem>>, vector<1x16x32xbf16>
    %18 = vector.shape_cast %17 : vector<1x16x32xbf16> to vector<16x32xbf16>
    %19 = vector.shape_cast %16 : vector<16x32xbf16> to vector<1x16x32xbf16>
    tpu.vector_store %arg11[%c0_13, %c0_14, %c0_15], %19 {strides = array<i32>} : memref<2x48x32xbf16, #tpu.memory_space<vmem>>, vector<1x16x32xbf16>,
    %20 = vector.extract_strided_slice %15 {offsets = [0, 32], sizes = [16, 32], strides = [1, 1]} : vector<32x96xbf16> to vector<16x32xbf16>
    %c0_16 = arith.constant 0 : index
    %c16 = arith.constant 16 : index
    %c0_17 = arith.constant 0 : index
    %21 = vector.load %arg11[%c0_16, %c16, %c0_17] : memref<2x48x32xbf16, #tpu.memory_space<vmem>>, vector<1x16x32xbf16>
    %22 = vector.shape_cast %21 : vector<1x16x32xbf16> to vector<16x32xbf16>
    %23 = vector.shape_cast %20 : vector<16x32xbf16> to vector<1x16x32xbf16>
    tpu.vector_store %arg11[%c0_16, %c16, %c0_17], %23 {strides = array<i32>} : memref<2x48x32xbf16, #tpu.memory_space<vmem>>, vector<1x16x32xbf16>,
    %24 = vector.extract_strided_slice %15 {offsets = [0, 64], sizes = [16, 32], strides = [1, 1]} : vector<32x96xbf16> to vector<16x32xbf16>
    %c0_18 = arith.constant 0 : index
    %c32 = arith.constant 32 : index
    %c0_19 = arith.constant 0 : index
    %25 = vector.load %arg11[%c0_18, %c32, %c0_19] : memref<2x48x32xbf16, #tpu.memory_space<vmem>>, vector<1x16x32xbf16>
    %26 = vector.shape_cast %25 : vector<1x16x32xbf16> to vector<16x32xbf16>
    %27 = vector.shape_cast %24 : vector<16x32xbf16> to vector<1x16x32xbf16>
    tpu.vector_store %arg11[%c0_18, %c32, %c0_19], %27 {strides = array<i32>} : memref<2x48x32xbf16, #tpu.memory_space<vmem>>, vector<1x16x32xbf16>,
    %28 = vector.extract_strided_slice %15 {offsets = [16, 0], sizes = [16, 32], strides = [1, 1]} : vector<32x96xbf16> to vector<16x32xbf16>
    %c1 = arith.constant 1 : index
    %c0_20 = arith.constant 0 : index
    %c0_21 = arith.constant 0 : index
    %29 = vector.load %arg11[%c1, %c0_20, %c0_21] : memref<2x48x32xbf16, #tpu.memory_space<vmem>>, vector<1x16x32xbf16>
    %30 = vector.shape_cast %29 : vector<1x16x32xbf16> to vector<16x32xbf16>
    %31 = vector.shape_cast %28 : vector<16x32xbf16> to vector<1x16x32xbf16>
    tpu.vector_store %arg11[%c1, %c0_20, %c0_21], %31 {strides = array<i32>} : memref<2x48x32xbf16, #tpu.memory_space<vmem>>, vector<1x16x32xbf16>,
    %32 = vector.extract_strided_slice %15 {offsets = [16, 32], sizes = [16, 32], strides = [1, 1]} : vector<32x96xbf16> to vector<16x32xbf16>
    %c1_22 = arith.constant 1 : index
    %c16_23 = arith.constant 16 : index
    %c0_24 = arith.constant 0 : index
    %33 = vector.load %arg11[%c1_22, %c16_23, %c0_24] : memref<2x48x32xbf16, #tpu.memory_space<vmem>>, vector<1x16x32xbf16>
    %34 = vector.shape_cast %33 : vector<1x16x32xbf16> to vector<16x32xbf16>
    %35 = vector.shape_cast %32 : vector<16x32xbf16> to vector<1x16x32xbf16>
    tpu.vector_store %arg11[%c1_22, %c16_23, %c0_24], %35 {strides = array<i32>} : memref<2x48x32xbf16, #tpu.memory_space<vmem>>, vector<1x16x32xbf16>,
    %36 = vector.extract_strided_slice %15 {offsets = [16, 64], sizes = [16, 32], strides = [1, 1]} : vector<32x96xbf16> to vector<16x32xbf16>
    %c1_25 = arith.constant 1 : index
    %c32_26 = arith.constant 32 : index
    %c0_27 = arith.constant 0 : index
    %37 = vector.load %arg11[%c1_25, %c32_26, %c0_27] : memref<2x48x32xbf16, #tpu.memory_space<vmem>>, vector<1x16x32xbf16>
    %38 = vector.shape_cast %37 : vector<1x16x32xbf16> to vector<16x32xbf16>
    %39 = vector.shape_cast %36 : vector<16x32xbf16> to vector<1x16x32xbf16>
    tpu.vector_store %arg11[%c1_25, %c32_26, %c0_27], %39 {strides = array<i32>} : memref<2x48x32xbf16, #tpu.memory_space<vmem>>, vector<1x16x32xbf16>,
    %c0_28 = arith.constant 0 : index
    %c0_29 = arith.constant 0 : index
    %c0_30 = arith.constant 0 : index
    %40 = vector.load %arg11[%c0_28, %c0_29, %c0_30] : memref<2x48x32xbf16, #tpu.memory_space<vmem>>, vector<2x48x32xbf16>
    "tpu.trace_start"() <{level = 10 : i32, message = "bds,bsc->bdc"}> : () -> ()
    %cst_31 = arith.constant dense<0.000000e+00> : vector<2x16x32xf32>
    %41 = tpu.matmul %1, %40, %cst_31 {dimension_numbers = #tpu.dot_dimension_numbers<[2], [1], [1], [2], [0, 0, 0, 1, 1, 2], [0], [0]>} : vector<2x16x48xbf16>, vector<2x48x32xbf16>, vector<2x16x32xf32> -> vector<2x16x32xf32>
    "tpu.trace_stop"() : () -> ()
    %42 = vector.shape_cast %41 : vector<2x16x32xf32> to vector<32x32xf32>
    %43 = arith.addf %13, %42 : vector<32x32xf32>
    %cst_32 = arith.constant 0.00999999977 : f32
    %44 = vector.broadcast %cst_32 : f32 to vector<32x32xf32>
    %45 = arith.mulf %44, %43 : vector<32x32xf32>
    %46 = arith.maximumf %43, %45 : vector<32x32xf32>
    %47 = arith.truncf %46 : vector<32x32xf32> to vector<32x32xbf16>
    %c1_33 = arith.constant 1 : index
    %c0_34 = arith.constant 0 : index
    %c0_35 = arith.constant 0 : index
    %48 = vector.load %arg5[%c1_33, %c0_34, %c0_35] : memref<2x32x128xbf16, #tpu.memory_space<vmem>>, vector<1x32x128xbf16>
    %49 = vector.shape_cast %48 : vector<1x32x128xbf16> to vector<32x128xbf16>
    %cst_36 = arith.constant dense<0.000000e+00> : vector<32x128xf32>
    %50 = tpu.matmul %47, %49, %cst_36 {dimension_numbers = #tpu.dot_dimension_numbers<[1], [0], [0], [1], [0, 0, 1, 1], [], []>} : vector<32x32xbf16>, vector<32x128xbf16>, vector<32x128xf32> -> vector<32x128xf32>
    %c1_37 = arith.constant 1 : index
    %c0_38 = arith.constant 0 : index
    %c0_39 = arith.constant 0 : index
    %51 = vector.load %arg6[%c1_37, %c0_38, %c0_39] : memref<2x1x128xf32, #tpu.memory_space<vmem>>, vector<1x1x128xf32>
    %52 = vector.shape_cast %51 : vector<1x1x128xf32> to vector<1x128xf32>
    %53 = vector.broadcast %52 : vector<1x128xf32> to vector<32x128xf32>
    %54 = arith.addf %50, %53 : vector<32x128xf32>
    %55 = vector.extract_strided_slice %54 {offsets = [0, 0], sizes = [32, 32], strides = [1, 1]} : vector<32x128xf32> to vector<32x32xf32>
    %56 = vector.extract_strided_slice %54 {offsets = [0, 32], sizes = [32, 96], strides = [1, 1]} : vector<32x128xf32> to vector<32x96xf32>
    %57 = arith.truncf %56 : vector<32x96xf32> to vector<32x96xbf16>
    %58 = vector.extract_strided_slice %57 {offsets = [0, 0], sizes = [16, 32], strides = [1, 1]} : vector<32x96xbf16> to vector<16x32xbf16>
    %c0_40 = arith.constant 0 : index
    %c0_41 = arith.constant 0 : index
    %c0_42 = arith.constant 0 : index
    %59 = vector.load %arg11[%c0_40, %c0_41, %c0_42] : memref<2x48x32xbf16, #tpu.memory_space<vmem>>, vector<1x16x32xbf16>
    %60 = vector.shape_cast %59 : vector<1x16x32xbf16> to vector<16x32xbf16>
    %61 = vector.shape_cast %58 : vector<16x32xbf16> to vector<1x16x32xbf16>
    tpu.vector_store %arg11[%c0_40, %c0_41, %c0_42], %61 {strides = array<i32>} : memref<2x48x32xbf16, #tpu.memory_space<vmem>>, vector<1x16x32xbf16>,
    %62 = vector.extract_strided_slice %57 {offsets = [0, 32], sizes = [16, 32], strides = [1, 1]} : vector<32x96xbf16> to vector<16x32xbf16>
    %c0_43 = arith.constant 0 : index
    %c16_44 = arith.constant 16 : index
    %c0_45 = arith.constant 0 : index
    %63 = vector.load %arg11[%c0_43, %c16_44, %c0_45] : memref<2x48x32xbf16, #tpu.memory_space<vmem>>, vector<1x16x32xbf16>
    %64 = vector.shape_cast %63 : vector<1x16x32xbf16> to vector<16x32xbf16>
    %65 = vector.shape_cast %62 : vector<16x32xbf16> to vector<1x16x32xbf16>
    tpu.vector_store %arg11[%c0_43, %c16_44, %c0_45], %65 {strides = array<i32>} : memref<2x48x32xbf16, #tpu.memory_space<vmem>>, vector<1x16x32xbf16>,
    %66 = vector.extract_strided_slice %57 {offsets = [0, 64], sizes = [16, 32], strides = [1, 1]} : vector<32x96xbf16> to vector<16x32xbf16>
    %c0_46 = arith.constant 0 : index
    %c32_47 = arith.constant 32 : index
    %c0_48 = arith.constant 0 : index
    %67 = vector.load %arg11[%c0_46, %c32_47, %c0_48] : memref<2x48x32xbf16, #tpu.memory_space<vmem>>, vector<1x16x32xbf16>
    %68 = vector.shape_cast %67 : vector<1x16x32xbf16> to vector<16x32xbf16>
    %69 = vector.shape_cast %66 : vector<16x32xbf16> to vector<1x16x32xbf16>
    tpu.vector_store %arg11[%c0_46, %c32_47, %c0_48], %69 {strides = array<i32>} : memref<2x48x32xbf16, #tpu.memory_space<vmem>>, vector<1x16x32xbf16>,
    %70 = vector.extract_strided_slice %57 {offsets = [16, 0], sizes = [16, 32], strides = [1, 1]} : vector<32x96xbf16> to vector<16x32xbf16>
    %c1_49 = arith.constant 1 : index
    %c0_50 = arith.constant 0 : index
    %c0_51 = arith.constant 0 : index
    %71 = vector.load %arg11[%c1_49, %c0_50, %c0_51] : memref<2x48x32xbf16, #tpu.memory_space<vmem>>, vector<1x16x32xbf16>
    %72 = vector.shape_cast %71 : vector<1x16x32xbf16> to vector<16x32xbf16>
    %73 = vector.shape_cast %70 : vector<16x32xbf16> to vector<1x16x32xbf16>
    tpu.vector_store %arg11[%c1_49, %c0_50, %c0_51], %73 {strides = array<i32>} : memref<2x48x32xbf16, #tpu.memory_space<vmem>>, vector<1x16x32xbf16>,
    %74 = vector.extract_strided_slice %57 {offsets = [16, 32], sizes = [16, 32], strides = [1, 1]} : vector<32x96xbf16> to vector<16x32xbf16>
    %c1_52 = arith.constant 1 : index
    %c16_53 = arith.constant 16 : index
    %c0_54 = arith.constant 0 : index
    %75 = vector.load %arg11[%c1_52, %c16_53, %c0_54] : memref<2x48x32xbf16, #tpu.memory_space<vmem>>, vector<1x16x32xbf16>
    %76 = vector.shape_cast %75 : vector<1x16x32xbf16> to vector<16x32xbf16>
    %77 = vector.shape_cast %74 : vector<16x32xbf16> to vector<1x16x32xbf16>
    tpu.vector_store %arg11[%c1_52, %c16_53, %c0_54], %77 {strides = array<i32>} : memref<2x48x32xbf16, #tpu.memory_space<vmem>>, vector<1x16x32xbf16>,
    %78 = vector.extract_strided_slice %57 {offsets = [16, 64], sizes = [16, 32], strides = [1, 1]} : vector<32x96xbf16> to vector<16x32xbf16>
    %c1_55 = arith.constant 1 : index
    %c32_56 = arith.constant 32 : index
    %c0_57 = arith.constant 0 : index
    %79 = vector.load %arg11[%c1_55, %c32_56, %c0_57] : memref<2x48x32xbf16, #tpu.memory_space<vmem>>, vector<1x16x32xbf16>
    %80 = vector.shape_cast %79 : vector<1x16x32xbf16> to vector<16x32xbf16>
    %81 = vector.shape_cast %78 : vector<16x32xbf16> to vector<1x16x32xbf16>
    tpu.vector_store %arg11[%c1_55, %c32_56, %c0_57], %81 {strides = array<i32>} : memref<2x48x32xbf16, #tpu.memory_space<vmem>>, vector<1x16x32xbf16>,
    %c0_58 = arith.constant 0 : index
    %c0_59 = arith.constant 0 : index
    %c0_60 = arith.constant 0 : index
    %82 = vector.load %arg11[%c0_58, %c0_59, %c0_60] : memref<2x48x32xbf16, #tpu.memory_space<vmem>>, vector<2x48x32xbf16>
    "tpu.trace_start"() <{level = 10 : i32, message = "bds,bsc->bdc"}> : () -> ()
    %cst_61 = arith.constant dense<0.000000e+00> : vector<2x16x32xf32>
    %83 = tpu.matmul %1, %82, %cst_61 {dimension_numbers = #tpu.dot_dimension_numbers<[2], [1], [1], [2], [0, 0, 0, 1, 1, 2], [0], [0]>} : vector<2x16x48xbf16>, vector<2x48x32xbf16>, vector<2x16x32xf32> -> vector<2x16x32xf32>
    "tpu.trace_stop"() : () -> ()
    %84 = vector.shape_cast %83 : vector<2x16x32xf32> to vector<32x32xf32>
    %85 = arith.addf %55, %84 : vector<32x32xf32>
    %cst_62 = arith.constant 0.00999999977 : f32
    %86 = vector.broadcast %cst_62 : f32 to vector<32x32xf32>
    %87 = arith.mulf %86, %85 : vector<32x32xf32>
    %88 = arith.maximumf %85, %87 : vector<32x32xf32>
    %c0_63 = arith.constant 0 : index
    %c0_64 = arith.constant 0 : index
    %c0_65 = arith.constant 0 : index
    %89 = vector.load %arg3[%c0_63, %c0_64, %c0_65] : memref<1x4x32xf32, #tpu.memory_space<vmem>>, vector<1x4x32xf32>
    %90 = vector.shape_cast %89 : vector<1x4x32xf32> to vector<4x32xf32>
    %cst_66 = arith.constant dense<0.000000e+00> : vector<4x32xf32>
    %91 = tpu.matmul %90, %88, %cst_66 {dimension_numbers = #tpu.dot_dimension_numbers<[1], [0], [0], [1], [0, 0, 1, 1], [], []>} : vector<4x32xf32>, vector<32x32xf32>, vector<4x32xf32> -> vector<4x32xf32>
    %92 = arith.truncf %91 : vector<4x32xf32> to vector<4x32xbf16>
    %c0_67 = arith.constant 0 : index
    %c0_68 = arith.constant 0 : index
    %93 = vector.load %arg9[%c0_67, %c0_68] : memref<1x33xf32, #tpu.memory_space<vmem>>, vector<1x32xf32>
    %c0_69 = arith.constant 0 : index
    %c32_70 = arith.constant 32 : index
    %94 = vector.load %arg9[%c0_69, %c32_70] : memref<1x33xf32, #tpu.memory_space<vmem>>, vector<1x1xf32>
    %c0_71 = arith.constant 0 : index
    %c0_72 = arith.constant 0 : index
    %95 = vector.load %arg7[%c0_71, %c0_72] : memref<32x32xbf16, #tpu.memory_space<vmem>>, vector<32x32xbf16>
    %cst_73 = arith.constant dense<0.000000e+00> : vector<4x32xf32>
    %96 = tpu.matmul %92, %95, %cst_73 {dimension_numbers = #tpu.dot_dimension_numbers<[1], [0], [0], [1], [0, 0, 1, 1], [], []>} : vector<4x32xbf16>, vector<32x32xbf16>, vector<4x32xf32> -> vector<4x32xf32>
    %97 = vector.broadcast %93 : vector<1x32xf32> to vector<4x32xf32>
    %98 = arith.addf %96, %97 : vector<4x32xf32>
    %cst_74 = arith.constant 0.000000e+00 : f32
    %99 = vector.broadcast %cst_74 : f32 to vector<4x32xf32>
    %100 = arith.maximumf %98, %99 : vector<4x32xf32>
    %101 = arith.truncf %100 : vector<4x32xf32> to vector<4x32xbf16>
    %c0_75 = arith.constant 0 : index
    %c0_76 = arith.constant 0 : index
    %102 = vector.load %arg8[%c0_75, %c0_76] : memref<32x1xbf16, #tpu.memory_space<vmem>>, vector<32x1xbf16>
    %cst_77 = arith.constant dense<0.000000e+00> : vector<4x1xf32>
    %103 = tpu.matmul %101, %102, %cst_77 {dimension_numbers = #tpu.dot_dimension_numbers<[1], [0], [0], [1], [0, 0, 1, 1], [], []>} : vector<4x32xbf16>, vector<32x1xbf16>, vector<4x1xf32> -> vector<4x1xf32>
    %104 = vector.broadcast %94 : vector<1x1xf32> to vector<4x1xf32>
    %105 = arith.addf %103, %104 : vector<4x1xf32>
    %c0_78 = arith.constant 0 : index
    %c0_79 = arith.constant 0 : index
    %c0_80 = arith.constant 0 : index
    %106 = vector.load %arg10[%c0_78, %c0_79, %c0_80] : memref<1x4x1xf32, #tpu.memory_space<vmem>>, vector<1x4x1xf32>
    %107 = vector.shape_cast %106 : vector<1x4x1xf32> to vector<4x1xf32>
    %108 = vector.shape_cast %105 : vector<4x1xf32> to vector<1x4x1xf32>
    tpu.vector_store %arg10[%c0_78, %c0_79, %c0_80], %108 {strides = array<i32>} : memref<1x4x1xf32, #tpu.memory_space<vmem>>, vector<1x4x1xf32>,
    return
  }
  func.func @transform_0(%arg0: i32) -> (i32, i32) {
    %c0_i32 = arith.constant 0 : i32
    %c0_i32_0 = arith.constant 0 : i32
    return %arg0, %c0_i32 : i32, i32
  }
  func.func @transform_1(%arg0: i32) -> (i32, i32, i32) {
    %c0_i32 = arith.constant 0 : i32
    %c0_i32_0 = arith.constant 0 : i32
    %c0_i32_1 = arith.constant 0 : i32
    return %arg0, %c0_i32, %c0_i32_0 : i32, i32, i32
  }
  func.func @transform_2(%arg0: i32) -> (i32, i32, i32) {
    %c0_i32 = arith.constant 0 : i32
    %c0_i32_0 = arith.constant 0 : i32
    %c0_i32_1 = arith.constant 0 : i32
    return %arg0, %c0_i32, %c0_i32_0 : i32, i32, i32
  }
  func.func @transform_3(%arg0: i32) -> (i32, i32) {
    %c0_i32 = arith.constant 0 : i32
    %c0_i32_0 = arith.constant 0 : i32
    %c0_i32_1 = arith.constant 0 : i32
    return %c0_i32, %c0_i32_0 : i32, i32
  }
  func.func @transform_4(%arg0: i32) -> (i32, i32, i32) {
    %c0_i32 = arith.constant 0 : i32
    %c0_i32_0 = arith.constant 0 : i32
    %c0_i32_1 = arith.constant 0 : i32
    %c0_i32_2 = arith.constant 0 : i32
    return %c0_i32, %c0_i32_0, %c0_i32_1 : i32, i32, i32
  }
  func.func @transform_5(%arg0: i32) -> (i32, i32, i32) {
    %c0_i32 = arith.constant 0 : i32
    %c0_i32_0 = arith.constant 0 : i32
    %c0_i32_1 = arith.constant 0 : i32
    %c0_i32_2 = arith.constant 0 : i32
    return %c0_i32, %c0_i32_0, %c0_i32_1 : i32, i32, i32
  }
  func.func @transform_6(%arg0: i32) -> (i32, i32) {
    %c0_i32 = arith.constant 0 : i32
    %c0_i32_0 = arith.constant 0 : i32
    %c0_i32_1 = arith.constant 0 : i32
    return %c0_i32, %c0_i32_0 : i32, i32
  }
  func.func @transform_7(%arg0: i32) -> (i32, i32) {
    %c0_i32 = arith.constant 0 : i32
    %c0_i32_0 = arith.constant 0 : i32
    %c0_i32_1 = arith.constant 0 : i32
    return %c0_i32, %c0_i32_0 : i32, i32
  }
  func.func @transform_8(%arg0: i32) -> (i32, i32) {
    %c0_i32 = arith.constant 0 : i32
    %c0_i32_0 = arith.constant 0 : i32
    %c0_i32_1 = arith.constant 0 : i32
    return %c0_i32, %c0_i32_0 : i32, i32
  }
  func.func @transform_9(%arg0: i32) -> (i32, i32, i32) {
    %c0_i32 = arith.constant 0 : i32
    %c0_i32_0 = arith.constant 0 : i32
    %c0_i32_1 = arith.constant 0 : i32
    return %arg0, %c0_i32, %c0_i32_0 : i32, i32, i32
  }
}

</mosaic_0001>

<bundles_post_ra>
// kernel: tpu_custom_call.1
= control target key start
LH: loop header
LB: loop body
LE: loop exit
PB: predicated region body
PF: predicated region fallthrough
CT: control target
= control target key end

     0   :  { %14 = vsyncpa [#allocation4], 0  ;;  %s1939_s0 = inlined_call_operand.vmem [shape: bf16[64,9], index: 0, kind: input, shape index: {}]   ;;  %s1940_s1 = inlined_call_operand.vmem [shape: s8[4,16,48], index: 1, kind: input, shape index: {}]   ;;  %s1941_s2 = inlined_call_operand.hbm [shape: f32[2,4,32], index: 2, kind: input, shape index: {}]   ;;  %s1942_s3 = inlined_call_operand.hbm [shape: bf16[9,32], index: 3, kind: input, shape index: {}]   ;;  %s1943_s4 = inlined_call_operand.vmem [shape: bf16[2,32,128], index: 4, kind: input, shape index: {}]   ;;  %s1944_s5 = inlined_call_operand.vmem [shape: f32[2,1,128], index: 5, kind: input, shape index: {}]   ;;  %s1945_s6 = inlined_call_operand.vmem [shape: bf16[32,32], index: 6, kind: input, shape index: {}]   ;;  %s1946_s7 = inlined_call_operand.vmem [shape: bf16[32,1], index: 7, kind: input, shape index: {}]   ;;  %s1947_s8 = inlined_call_operand.vmem [shape: f32[1,33], index: 8, kind: input, shape index: {}]   ;;  %s1948_s9 = inlined_call_operand.vmem [shape: f32[2,4,1], index: 9, kind: output, shape index: {}]  }
   0x1   :  { %16 = vsyncpa [#allocation4 + $0x1], 0 }
   0x2   :  { %17 = vsyncpa [#allocation6], 0  ;;  %s1660_s30 = smov 0   ;;  %s1662_s10 = smov 0  }
   0x3   :  { %s1664_s11 = smov 0   ;;  %s1666_s12 = smov 0  }
   0x4 LB: > { %s1679_s13 = sadd.s32 4294967295, %s1597_s12   ;;  %p95_p0 = scmp.ne.s32.totalorder %s1589_s10, %s1585_s30  ;;  %s1597_s12 = sphi %s1666_s12, %s1963_s12   ;;  %s1593_s11 = sphi %s1664_s11, %s1966_s11   ;;  %s1589_s10 = sphi %s1662_s10, %s1965_s10   ;;  %s1585_s30 = sphi %s1660_s30, %s1964_s30  }
   0x5   : > { %p1949_p1 = scmp.eq.s32.totalorder %s1679_s13, 0  ;;  %p1247_p2 = scmp.ge.s32.totalorder %s1597_s12, 1 }
   0x6   : > { %p258_p3 = scmp.lt.s32.totalorder %s1597_s12, 3  ;;  %s1599_s16 = smov [#allocation5]  }
   0x7   : > { %p1687_p4 = por %p1949_p1, %p95_p0  ;;  %s270_s17 = sshll.u32 %s1599_s16, 4  ;;  %s271_s17 = int_to_ptr.vmem [resolvable:$true] %s270_s17 }
   0x8   : > { %p1691_p5 = pnand %p1247_p2, %p258_p3  ;;  %s1704_s19 = sadd.s32 1, %s1597_s12  }
   0x9   : > { %s1954_s14 = scalar_select %p1687_p4, 1, 0 }
   0xa   : > { %s1955_s15 = scalar_select %p1691_p5, 1, 0 }
   0xb   : > { %p1437_p6 = pneg %p1691_p5  ;;  %1957 = sst [smem:[#allocation9_spill]] %s1704_s19 }
   0xc   : > { %s82_s20 = sadd.s32 1, %s1593_s11  ;;  %s79_s21 = ssub.s32 %s1597_s12, %s1704_s19 }
   0xd   : > { %p1699_p7 = pnand %p1437_p6, %p1949_p1  ;;  %s1501_s24 = scalar_lea.hbm %s1942_s3, 128 }
   0xe   : > { %p1502_p8 = scmp.ne.s32.totalorder %s1942_s3, %s1501_s24  ;;  %p1508_p12 = scmp.lt.u32.totalorder %s1501_s24, %s1942_s3 }
   0xf   : > { %p1503_p9 = pneg %p1699_p7 }
  0x11   : > { %p1504_p10 = pnand %p1503_p9, %p1502_p8 }
  0x13   : > { %p1505_p11 = pneg %p1504_p10 }
  0x15   : > { %p1510_p13 = pnand %p1508_p12, %p1505_p11 }
  0x17   : > { %1513 = shalt.err (!%p1510_p13)
}
  0x18   : > { %s1514_s29 = scalar_lea.vmem %s271_s17, 128  ;;  %p1522_p6 = scmp.lt.s32.totalorder %s271_s17, %s271_s17 }
  0x19   : > { %p1515_p0 = scmp.ne.s32.totalorder %s271_s17, %s1514_s29  ;;  %p1523_p1 = scmp.lt.s32.totalorder %s1514_s29, %s1514_s29 }
  0x1b   : > { %p1517_p2 = pnand %p1515_p0, %p1503_p9  ;;  %p1524_p4 = por %p1523_p1, %p1522_p6 }
  0x1d   : > { %p1518_p3 = pneg %p1517_p2 }
  0x1f   : > { %p1525_p5 = pnand %p1524_p4, %p1518_p3 }
  0x21   : > { %1528 = shalt.err (!%p1525_p5)
}
  0x22   : > { %s1600_s30 = smov 64   ;;  %s1601_s16 = smov 4  }
  0x23   : > { %1440 = dma.hbm_to_vmem [thread:$0]  (!%p1699_p7), %s1942_s3, 128, %s271_s17, [#allocation6], %s1600_s30, %s1600_s30, %s1601_s16  }
  0x24   : > { %p80_p8 = scmp.eq.s32.totalorder %s79_s21, 0  ;;  %p89_p9 = scmp.ne.s32.totalorder %s1593_s11, %s1589_s10 }
  0x25   : > { %p90_p1 = scmp.eq.s32.totalorder %s1597_s12, 0  ;;  %p1446_p4 = scmp.lt.s32.totalorder %s1597_s12, 2 }
  0x26   : > { %s1730_s24 = scalar_select %p80_p8, %s1593_s11, %s82_s20  }
  0x27   : > { %p91_p5 = por %p90_p1, %p89_p9  ;;  %s318_s25 = sand.u32 1, %s1593_s11  }
  0x28   : > { %s1250_s26 = sshll.u32 %s318_s25, 2  ;;  %s1251_s27 = sshll.u32 %s1597_s12, 6 }
  0x29   : > { %s1737_s19 = scalar_lea.hbm %s1941_s2, %s1251_s27  ;;  %s322_s17 = scalar_lea.vmem [#allocation3], %s1250_s26 }
  0x2a   : > { %s329_s18 = sshll.u32 %s322_s17, 4  ;;  %p1741_p7 = pnand %p1446_p4, %p91_p5  ;;  %s1739_s18 = int_to_ptr.vmem [resolvable:$true] %s329_s18 }
  0x2b   : > { %s319_s12 = scalar_lea.sflag [#allocation4], %s318_s25  ;;  %s1529_s21 = scalar_lea.hbm %s1737_s19, 64 }
  0x2c   : > { %p1530_p10 = scmp.ne.s32.totalorder %s1737_s19, %s1529_s21  ;;  %p1531_p11 = pneg %p1741_p7 }
  0x2d   : > { %s1534_s22 = scalar_lea.hbm %s1941_s2, 128  ;;  %p1535_p0 = scmp.lt.u32.totalorder %s1737_s19, %s1941_s2 }
  0x2e   : > { %p1532_p12 = pnand %p1531_p11, %p1530_p10  ;;  %p1536_p2 = scmp.lt.u32.totalorder %s1534_s22, %s1529_s21 }
  0x2f   : > { %p1538_p6 = scmp.lt.u32.totalorder %s1529_s21, %s1737_s19 }
  0x30   : > { %p1533_p13 = pneg %p1532_p12  ;;  %p1537_p3 = por %p1536_p2, %p1535_p0 }
  0x32   : > { %p1539_p8 = por %p1538_p6, %p1537_p3 }
  0x34   : > { %p1540_p9 = pnand %p1539_p8, %p1533_p13 }
  0x36   : > { %1543 = shalt.err (!%p1540_p9)
}
  0x37   : > { %s1544_s25 = scalar_lea.vmem %s1739_s18, 64  ;;  %s1602_s27 = smov [#allocation3]  }
  0x38   : > { %p1545_p1 = scmp.ne.s32.totalorder %s1739_s18, %s1544_s25  ;;  %s1549_s28 = sshll.u32 %s1602_s27, 4  ;;  %s1550_s28 = int_to_ptr.vmem [resolvable:$false] %s1549_s28 }
  0x39   : > { %s1551_s29 = scalar_lea.vmem %s1550_s28, 128  ;;  %p1552_p10 = scmp.lt.s32.totalorder %s1739_s18, %s1550_s28 }
  0x3a   : > { %p1547_p4 = pnand %p1545_p1, %p1531_p11  ;;  %p1553_p12 = scmp.lt.s32.totalorder %s1551_s29, %s1544_s25 }
  0x3c   : > { %p1548_p5 = pneg %p1547_p4  ;;  %p1554_p0 = por %p1553_p12, %p1552_p10 }
  0x3e   : > { %p1555_p2 = pnand %p1554_p0, %p1548_p5 }
  0x40   : > { %1558 = shalt.err (!%p1555_p2)
}
  0x41   : > { %1444 = dma.hbm_to_vmem [thread:$0]  (!%p1741_p7), %s1737_s19, 64, %s1739_s18, %s319_s12  }
  0x42   : > { %p1959_p13 = scmp.ne.s32.totalorder %s1955_s15, 0 }
  0x43   : > { %s340_s17 = sand.u32 (!%p1959_p13), 1, %s1589_s10   ;;  %p1960_p11 = scmp.ne.s32.totalorder (!%p1959_p13), %s1954_s14, 0 }
  0x44   : > { %338 = sbr.rel (%p1959_p13) target bundleno = 2114 (0x842), region = 56  ;;  %s1773_s21 = sshll.u32 (!%p1959_p13), %s340_s17, 2 }
  0x45   : > { %s341_s30 = scalar_lea.sflag (!%p1959_p13), [#allocation4], %s340_s17  ;;  %s344_s16 = scalar_lea.vmem (!%p1959_p13), [#allocation3], %s1773_s21 }
  0x4b   : > { %1576 = dma.done.wait (%p1960_p11), %s341_s30, 64  }
  0x4c   : > { %1578 = vsyncadd (%p1960_p11), %s341_s30, 4294967232  ;;  %p1961_p3 = scmp.eq.s32.totalorder %s1679_s13, 0 }
  0x4e   : > { %1580 = dma.done.wait (%p1961_p3), [#allocation6], 128   ;;  %p1962_p7 = pmov %p1961_p3 }
  0x4f   : > { %vm447_vm0 = vcmask 1043456   ;;  %s1255_s15 = sshll.u32 %s1679_s13, 2  ;;  %vm448_vm1 = vcmask 1044480   ;;  %v1603_v0 = vmov 65535   ;;  %vm440_vm2 = vcmask 72704   ;;  %v1493_v7 = vld [vmem:[%s1943_s4] sm:$0xff]  }
  0x50   : > { %1582 = vsyncadd (%p1962_p7), [#allocation6], 4294967168  ;;  %p394_p6 = scmp.lt.s32.totalorder %s1255_s15, 7  ;;  %v449_v1 = vsel %vm447_vm0, 4294967295, %v1603_v0  ;;  %v1490_v3 = vld [vmem:[#allocation5] sm:$0x1f]   ;;  %1342 = vmatprep.subr.bf16.mxu1 %v1493_v7 }
  0x51   : > { %v450_v2 = vsel %vm448_vm1, %v449_v1, 0  ;;  %1343 = vmatpush3.bf16.msra.mxu1 %v1493_v7  ;;  %v1494_v8 = vld [vmem:[%s1943_s4 + $0x8] sm:$0xff]   ;;  %vm528_vm3 = vcmask 261120   ;;  %v1604_v16 = vmov 0.0   ;;  %v1266_v17 = vld [vmem:[%s1944_s5] ss:$0 sm:$0xff] }
  0x52   : > { %s1968_s15 = smov (!%p394_p6, %s1255_s15), 7  ;;  %v452_v5 = vand.u32 %v1490_v3, %v450_v2  ;;  %1344 = vmatprep.subr.bf16.mxu1 %v1494_v8  ;;  %s1605_s28 = smov 64   ;;  %vm1607_vm4 = vmmov 0   ;;  %vm624_vm5 = vcmask 392192   ;;  %v1495_v49 = vld [vmem:[%s1943_s4 + $0x10] sm:$0xff]   ;;  %v1496_v50 = vld [vmem:[%s1943_s4 + $0x18] sm:$0xff]  }
  0x53   : > { %s1256_s19 = sshll.u32 %s1968_s15, 2  ;;  %s1606_s29 = smov 96   ;;  %vm1145_vm6 = vcmask 3072  }
  0x54   : > { %s397_s14 = scalar_lea.vmem %s1939_s0, %s1256_s19  ;;  %1336 = vmatprep.subr.bf16.mxu0 %v452_v5  ;;  %s1608_s17 = smov 32  }
  0x55   : > { %v1491_v4 = vld [vmem:[%s397_s14] sm:$0xff]   ;;  %v1492_v6 = vld [vmem:[%s397_s14 + $0x8] sm:$0xff]   ;;  %1337 = vmatpush3.bf16.msra.mxu0 %v452_v5  ;;  %1345 = vmatpush3.bf16.msra.mxu1 %v1494_v8  ;;  %s1257_s30 = sshll.u32 %s1679_s13, 1  ;;  %p406_p9 = scmp.lt.s32.totalorder %s1679_s13, 1 }
  0x56   : > { %1338 = vmatprep.mubr.msk.bf16.mxu0 %vm440_vm2, %v1491_v4  ;;  %1350 = vmatprep.subr.bf16.mxu0 %v1604_v16  ;;  %p400_p8 = scmp.lt.s32.totalorder %s1257_s30, 3 }
  0x57   : > { %1360 = vmatprep.subr.bf16.mxu1 %v1604_v16  ;;  %s1972_s13 = smov (!%p406_p9, %s1679_s13), 1 }
  0x58   : > { %1339 = vmatmul.mubr.msk.bf16.vlgmr.msra.gmra.mrb[0].mxu0 %vm440_vm2, %v1492_v6  ;;  %s1970_s30 = smov (!%p400_p8, %s1257_s30), 3 }
  0x59   : > { %1356 = vmatprep.mubr.msk.bf16.mxu0 %vm1607_vm4, %v1604_v16  ;;  %s1297_s15 = sshll.u32 %s1970_s30, 2 }
  0x5a   : > { %s404_s20 = scalar_lea.vmem %s1940_s1, %s1297_s15 }
  0x5b   : > { %v411_v34 = vld [vmem:[%s404_s20] sm:$0x3]  ;;  %v412_v35 = vld [vmem:[%s404_s20 + $0x2] sm:$0x3]  ;;  %v413_v40 = vld [vmem:[%s404_s20 + $0x4] sm:$0x3] }
  0x5c   : > { %v415_v38 = vunpack.c.l.s8.bf16 %v411_v34  ;;  %v416_v39 = vunpack.c.l.s8.bf16 %v412_v35  ;;  %v414_v41 = vld [vmem:[%s404_s20 + $0x6] sm:$0x3]  ;;  %v417_v45 = vunpack.c.l.s8.bf16 %v413_v40 }
  0x5d   : > { %v418_v46 = vunpack.c.l.s8.bf16 %v414_v41  ;;  %v1497_v34 = vld [vmem:[%s1945_s6] sm:$0xff]  }
  0x5e   : > { %v1836_v44 = vcombine.low %v415_v38, %v416_v39 }
  0x5f   : > { %v1841_v48 = vcombine.low %v417_v45, %v418_v46 }
 0x12b   : > { %v1340_v9 = vpop.f32.mrb[0].mxu0 }
 0x12c   : > { %v488_v10 = vpop.f32.mrb[1].mxu0 }
 0x12d   : > { %v1341_v11 = vpop.f32.mrb[2].mxu0 }
 0x12e   : > { %v504_v12 = vpack.c.bf16 %v1341_v11, %v1340_v9  ;;  %v491_v13 = vpop.f32.mrb[3].mxu0 }
 0x12f   : > { %v503_v14 = vpack.c.bf16 %v491_v13, %v488_v10  ;;  %v1280_v10 = vld [vmem:[%s1944_s5 + $0x1] ss:$0 sm:$0xff] }
 0x131   : > { %1346 = vmatprep.mubr.msk.bf16.mxu1 %vm528_vm3, %v503_v14 }
 0x132   : > { %1347 = vmatmul.mubr.msk.bf16.vlgmr.msra.gmra.mrb[0].mxu1 %vm528_vm3, %v504_v12 }
 0x133   : > { %1366 = vmatprep.mubr.msk.bf16.mxu1 %vm1607_vm4, %v1604_v16 }
 0x205   : > { %v1348_v15 = vpop.f32.mrb[0].mxu1 }
 0x206   : > { %v569_v18 = vpop.f32.mrb[1].mxu1  ;;  %v1809_v25 = vadd.f32 %v1348_v15, %v1266_v17 }
 0x207   : > { %v1349_v19 = vpop.f32.mrb[2].mxu1  ;;  %v1801_v21 = vadd.f32 %v1266_v17, %v569_v18 }
 0x208   : > { %v572_v20 = vpop.f32.mrb[3].mxu1  ;;  %v1805_v23 = vadd.f32 %v1349_v19, %v1266_v17 }
 0x209   : > { %v1803_v22 = vadd.f32 %v1266_v17, %v572_v20 }
 0x20a   : > { %v585_v26 = vpack.c.bf16 %v1805_v23, %v1809_v25 }
 0x20b   : > { %v584_v24 = vpack.c.bf16 %v1803_v22, %v1801_v21 }
 0x20d   : > { %591 = vrot.lane.b32.xlu1 %v584_v24, %s1605_s28  ;;  %587 = vrot.lane.b32.xlu0 %v584_v24, %s1606_s29 }
 0x211   : > { %605 = vrot.lane.b32.xlu1 %v585_v26, %s1605_s28  ;;  %600 = vrot.lane.b32.xlu0 %v585_v26, %s1606_s29 }
 0x215   : > { %609 = vrot.lane.b32.xlu1 %v585_v26, %s1608_s17  ;;  %595 = vrot.lane.b32.xlu0 %v584_v24, %s1608_s17 }
 0x27f   : > { %v592_v27 = vpop.permute.xlu1 %591  ;;  %v588_v28 = vpop.permute.xlu0 %587 }
 0x280   : > { %594 = vst.msk [vmem:[#allocation2 + $0x8] sm:$0xff] %vm528_vm3, %v592_v27  ;;  %590 = vst.msk [vmem:[#allocation2] sm:$0xff] %vm528_vm3, %v588_v28 }
 0x283   : > { %v606_v29 = vpop.permute.xlu1 %605  ;;  %v601_v30 = vpop.permute.xlu0 %600 }
 0x284   : > { %608 = vst.msk [vmem:[#allocation2 + $0x20] sm:$0xff] %vm528_vm3, %v606_v29  ;;  %604 = vst.msk [vmem:[#allocation2 + $0x18] sm:$0xff] %vm528_vm3, %v601_v30 }
 0x287   : > { %v610_v31 = vpop.permute.xlu1 %609  ;;  %v596_v32 = vpop.permute.xlu0 %595  ;;  %v613_v33 = vld [vmem:[#allocation2] sm:$0xff]  ;;  %v614_v36 = vld [vmem:[#allocation2 + $0x8] sm:$0xff] }
 0x288   : > { %612 = vst.msk [vmem:[#allocation2 + $0x28] sm:$0xff] %vm528_vm3, %v610_v31  ;;  %598 = vst.msk [vmem:[#allocation2 + $0x10] sm:$0xff] %vm528_vm3, %v596_v32  ;;  %1351 = vmatpush3.bf16.msra.mxu0 %v613_v33  ;;  %v1609_v33 = vmov 0.0|0.0  }
 0x289   : > { %1352 = vmatprep.subr.bf16.mxu0 %v1604_v16 }
 0x28b   : > { %v616_v37 = vld [vmem:[#allocation2 + $0x18] sm:$0xff]  ;;  %v617_v43 = vld [vmem:[#allocation2 + $0x20] sm:$0xff] }
 0x28c   : > { %1353 = vmatpush3.bf16.msra.mxu0 %v614_v36  ;;  %1361 = vmatpush3.bf16.msra.mxu1 %v616_v37 }
 0x28d   : > { %1354 = vmatprep.subr.bf16.mxu0 %v1604_v16  ;;  %1362 = vmatprep.subr.bf16.mxu1 %v1604_v16 }
 0x28f   : > { %v615_v42 = vld [vmem:[#allocation2 + $0x10] sm:$0xff]  ;;  %v618_v47 = vld [vmem:[#allocation2 + $0x28] sm:$0xff] }
 0x290   : > { %1355 = vmatpush3.bf16.msra.mxu0 %v615_v42  ;;  %1363 = vmatpush3.bf16.msra.mxu1 %v617_v43 }
 0x291   : > { %1364 = vmatprep.subr.bf16.mxu1 %v1604_v16  ;;  %1370 = vmatprep.subr.bf16.mxu0 %v1495_v49 }
 0x293   : > { %1357 = vmatmul.mubr.msk.bf16.vlgmr.msra.gmra.mrb[4].mxu0 %vm624_vm5, %v1836_v44 }
 0x294   : > { %1365 = vmatpush3.bf16.msra.mxu1 %v618_v47  ;;  %1371 = vmatpush3.bf16.msra.mxu0 %v1495_v49 }
 0x295   : > { %1378 = vmatprep.subr.bf16.mxu1 %v1604_v16  ;;  %1372 = vmatprep.subr.bf16.mxu0 %v1496_v50 }
 0x297   : > { %1367 = vmatmul.mubr.msk.bf16.vlgmr.msra.gmra.mrb[4].mxu1 %vm624_vm5, %v1841_v48 }
 0x298   : > { %1384 = vmatprep.mubr.msk.bf16.mxu1 %vm1607_vm4, %v1604_v16  ;;  %1373 = vmatpush3.bf16.msra.mxu0 %v1496_v50 }
 0x299   : > { %1388 = vmatprep.subr.bf16.mxu0 %v1604_v16 }
 0x366   : > { %v662_v51 = vpop.f32.mrb[4].mxu0 }
 0x367   : > { %v718_v52 = vadd.f32 %v662_v51, %v1801_v21  ;;  %v1358_v53 = vpop.f32.mrb[5].mxu0 }
 0x368   : > { %v665_v54 = vpop.f32.mrb[6].mxu0 }
 0x369   : > { %v722_v55 = vmul.f32 0.01, %v718_v52  ;;  %v719_v56 = vadd.f32 %v665_v54, %v1803_v22  ;;  %v1359_v57 = vpop.f32.mrb[7].mxu0 }
 0x36a   : > { %v711_v58 = vpop.f32.mrb[4].mxu1  ;;  %v940_v57 = vld [vmem:[%s344_s16] sm:$0xf] }
 0x36b   : > { %v723_v59 = vmul.f32 0.01, %v719_v56  ;;  %v720_v60 = vadd.f32 %v711_v58, %v1809_v25  ;;  %v1368_v61 = vpop.f32.mrb[5].mxu1  ;;  %v726_v63 = vmax.f32 %v718_v52, %v722_v55  ;;  %v1498_v58 = vld [vmem:[%s1945_s6 + $0x8] sm:$0xff]  }
 0x36c   : > { %v714_v62 = vpop.f32.mrb[6].mxu1 }
 0x36d   : > { %v727_v0 = vmax.f32 %v719_v56, %v723_v59  ;;  %v724_v1 = vmul.f32 0.01, %v720_v60  ;;  %v721_v2 = vadd.f32 %v714_v62, %v1805_v23  ;;  %v1369_v3 = vpop.f32.mrb[7].mxu1  ;;  %v1288_v59 = vld [vmem:[%s1947_s8] ss:$0 sm:$0xff] }
 0x36f   : > { %v730_v4 = vpack.c.bf16 %v727_v0, %v726_v63  ;;  %v725_v5 = vmul.f32 0.01, %v721_v2  ;;  %v728_v6 = vmax.f32 %v720_v60, %v724_v1  ;;  %v1499_v63 = vld [vmem:[%s1946_s7] sm:$0xff]   ;;  %v1500_v0 = vld [vmem:[%s1946_s7 + $0x8] sm:$0xff]  }
 0x371   : > { %v729_v7 = vmax.f32 %v721_v2, %v725_v5  ;;  %1374 = vmatprep.mubr.msk.bf16.mxu0 %vm528_vm3, %v730_v4 }
 0x373   : > { %v731_v8 = vpack.c.bf16 %v729_v7, %v728_v6 }
 0x375   : > { %1375 = vmatmul.mubr.msk.bf16.vlgmr.msra.gmra.mrb[8].mxu0 %vm528_vm3, %v731_v8 }
 0x376   : > { %1394 = vmatprep.mubr.msk.bf16.mxu0 %vm1607_vm4, %v1604_v16 }
 0x448   : > { %v1376_v9 = vpop.f32.mrb[8].mxu0 }
 0x449   : > { %v797_v11 = vpop.f32.mrb[9].mxu0  ;;  %v806_v19 = vadd.f32 %v1376_v9, %v1280_v10 }
 0x44a   : > { %v1377_v12 = vpop.f32.mrb[10].mxu0  ;;  %v798_v14 = vadd.f32 %v1280_v10, %v797_v11 }
 0x44b   : > { %v800_v13 = vpop.f32.mrb[11].mxu0  ;;  %v1866_v17 = vadd.f32 %v1377_v12, %v1280_v10 }
 0x44c   : > { %v801_v15 = vadd.f32 %v1280_v10, %v800_v13 }
 0x44d   : > { %v813_v20 = vpack.c.bf16 %v1866_v17, %v806_v19 }
 0x44e   : > { %v812_v18 = vpack.c.bf16 %v801_v15, %v798_v14 }
 0x450   : > { %819 = vrot.lane.b32.xlu1 %v812_v18, %s1605_s28  ;;  %815 = vrot.lane.b32.xlu0 %v812_v18, %s1606_s29 }
 0x454   : > { %823 = vrot.lane.b32.xlu1 %v812_v18, %s1608_s17  ;;  %828 = vrot.lane.b32.xlu0 %v813_v20, %s1606_s29 }
 0x458   : > { %836 = vrot.lane.b32.xlu1 %v813_v20, %s1608_s17  ;;  %832 = vrot.lane.b32.xlu0 %v813_v20, %s1605_s28 }
 0x45c   : > { %1099 = vrot.lane.b32.xlu0 %v1288_v59, %s1606_s29  ;;  %s1260_s29 = sshll.u32 %s1972_s13, 2 }
 0x45d   : > { %s409_s22 = scalar_lea.vmem %s1948_s9, %s1260_s29 }
 0x4c2   : > { %v820_v21 = vpop.permute.xlu1 %819  ;;  %v816_v22 = vpop.permute.xlu0 %815 }
 0x4c3   : > { %822 = vst.msk [vmem:[#allocation2 + $0x8] sm:$0xff] %vm528_vm3, %v820_v21  ;;  %818 = vst.msk [vmem:[#allocation2] sm:$0xff] %vm528_vm3, %v816_v22 }
 0x4c6   : > { %v824_v23 = vpop.permute.xlu1 %823  ;;  %v829_v24 = vpop.permute.xlu0 %828 }
 0x4c7   : > { %826 = vst.msk [vmem:[#allocation2 + $0x10] sm:$0xff] %vm528_vm3, %v824_v23  ;;  %831 = vst.msk [vmem:[#allocation2 + $0x18] sm:$0xff] %vm528_vm3, %v829_v24 }
 0x4ca   : > { %v837_v25 = vpop.permute.xlu1 %836  ;;  %v833_v26 = vpop.permute.xlu0 %832  ;;  %v840_v27 = vld [vmem:[#allocation2] sm:$0xff]  ;;  %v841_v28 = vld [vmem:[#allocation2 + $0x8] sm:$0xff] }
 0x4cb   : > { %839 = vst.msk [vmem:[#allocation2 + $0x28] sm:$0xff] %vm528_vm3, %v837_v25  ;;  %835 = vst.msk [vmem:[#allocation2 + $0x20] sm:$0xff] %vm528_vm3, %v833_v26  ;;  %1379 = vmatpush3.bf16.msra.mxu1 %v840_v27 }
 0x4cc   : > { %1380 = vmatprep.subr.bf16.mxu1 %v1604_v16 }
 0x4ce   : > { %v843_v29 = vld [vmem:[#allocation2 + $0x18] sm:$0xff]  ;;  %v842_v30 = vld [vmem:[#allocation2 + $0x10] sm:$0xff]  ;;  %v1100_v8 = vpop.permute.xlu0 %1099 }
 0x4cf   : > { %1381 = vmatpush3.bf16.msra.mxu1 %v841_v28  ;;  %1389 = vmatpush3.bf16.msra.mxu0 %v843_v29 }
 0x4d0   : > { %1382 = vmatprep.subr.bf16.mxu1 %v1604_v16  ;;  %1390 = vmatprep.subr.bf16.mxu0 %v1604_v16 }
 0x4d2   : > { %v844_v31 = vld [vmem:[#allocation2 + $0x20] sm:$0xff]  ;;  %v845_v32 = vld [vmem:[#allocation2 + $0x28] sm:$0xff] }
 0x4d3   : > { %1383 = vmatpush3.bf16.msra.mxu1 %v842_v30  ;;  %1391 = vmatpush3.bf16.msra.mxu0 %v844_v31 }
 0x4d4   : > { %1392 = vmatprep.subr.bf16.mxu0 %v1604_v16  ;;  %1425 = vmatprep.subr.bf16.mxu1 %v1609_v33 }
 0x4d6   : > { %1385 = vmatmul.mubr.msk.bf16.vlgmr.msra.gmra.mrb[8].mxu1 %vm624_vm5, %v1836_v44 }
 0x4d7   : > { %1393 = vmatpush3.bf16.msra.mxu0 %v845_v32  ;;  %1406 = vmatprep.mubr.msk.f32.mxu1 %vm1607_vm4, %v1604_v16 }
 0x4d8   : > { %1409 = vmatprep.subr.bf16.mxu0 %v1604_v16 }
 0x4da   : > { %1395 = vmatmul.mubr.msk.bf16.vlgmr.msra.gmra.mrb[12].mxu0 %vm624_vm5, %v1841_v48 }
 0x4db   : > { %1413 = vmatprep.mubr.msk.bf16.mxu0 %vm1607_vm4, %v1604_v16  ;;  %1410 = vmatpush3.bf16.msra.mxu0 %v1497_v34 }
 0x4dc   : > { %1411 = vmatprep.subr.bf16.mxu0 %v1604_v16 }
 0x4df   : > { %1412 = vmatpush3.bf16.msra.mxu0 %v1498_v58 }
 0x5a9   : > { %v880_v35 = vpop.f32.mrb[8].mxu1 }
 0x5aa   : > { %v928_v36 = vadd.f32 %v880_v35, %v798_v14  ;;  %v1386_v37 = vpop.f32.mrb[9].mxu1 }
 0x5ab   : > { %v883_v38 = vpop.f32.mrb[10].mxu1 }
 0x5ac   : > { %v932_v39 = vmul.f32 0.01, %v928_v36  ;;  %v929_v40 = vadd.f32 %v883_v38, %v801_v15  ;;  %v1387_v41 = vpop.f32.mrb[11].mxu1 }
 0x5ad   : > { %v921_v42 = vpop.f32.mrb[12].mxu0 }
 0x5ae   : > { %v933_v43 = vmul.f32 0.01, %v929_v40  ;;  %v930_v44 = vadd.f32 %v921_v42, %v806_v19  ;;  %v1396_v45 = vpop.f32.mrb[13].mxu0  ;;  %v936_v47 = vmax.f32 %v928_v36, %v932_v39 }
 0x5af   : > { %v924_v46 = vpop.f32.mrb[14].mxu0 }
 0x5b0   : > { %v937_v48 = vmax.f32 %v929_v40, %v933_v43  ;;  %v934_v49 = vmul.f32 0.01, %v930_v44  ;;  %v931_v50 = vadd.f32 %v924_v46, %v1866_v17  ;;  %v1397_v51 = vpop.f32.mrb[15].mxu0 }
 0x5b2   : > { %v1426_v52 = vpack.c.bf16 %v937_v48, %v936_v47  ;;  %v935_v53 = vmul.f32 0.01, %v931_v50  ;;  %v938_v54 = vmax.f32 %v930_v44, %v934_v49 }
 0x5b4   : > { %v939_v55 = vmax.f32 %v931_v50, %v935_v53  ;;  %1427 = vmatpush3.bf16.msra.mxu1 %v1426_v52 }
 0x5b5   : > { %1428 = vmatprep.subr.bf16.mxu1 %v1609_v33 }
 0x5b6   : > { %v1429_v56 = vpack.c.bf16 %v939_v55, %v938_v54 }
 0x5b8   : > { %1430 = vmatpush3.bf16.msra.mxu1 %v1429_v56 }
 0x5b9   : > { %1417 = vmatprep.subr.bf16.mxu1 %v1604_v16 }
 0x5bb   : > { %1407 = vmatmul.mubr.msk.f32.vlgmr.msra.gmra.mrb[12].mxu1 %vm528_vm3, %v940_v57 }
 0x5bc   : > { %1421 = vmatprep.mubr.msk.bf16.mxu1 %vm1607_vm4, %v1604_v16  ;;  %1418 = vmatpush3.bf16.msra.mxu1 %v1499_v63 }
 0x5bd   : > { %1419 = vmatprep.subr.bf16.mxu1 %v1604_v16 }
 0x5c0   : > { %1420 = vmatpush3.bf16.msra.mxu1 %v1500_v0 }
 0x68e   : > { %v1010_v60 = vpop.f32.mrb[12].mxu1 }
 0x68f   : > { %v1014_v61 = vpack.c.bf16 %v1010_v60, %v1010_v60  ;;  %v1408_v62 = vpop.f32.mrb[13].mxu1 }
 0x691   : > { %1414 = vmatmul.mubr.msk.bf16.vlgmr.msra.gmra.mrb[16].mxu0 %vm528_vm3, %v1014_v61 }
 0x764   : > { %v1075_v1 = vpop.f32.mrb[16].mxu0 }
 0x765   : > { %v1076_v2 = vadd.f32 %v1288_v59, %v1075_v1  ;;  %v1415_v3 = vpop.f32.mrb[17].mxu0 }
 0x766   : > { %v1078_v4 = vpop.f32.mrb[18].mxu0 }
 0x767   : > { %v1081_v5 = vmax.f32 %v1076_v2, 0.0  ;;  %v1416_v6 = vpop.f32.mrb[19].mxu0 }
 0x769   : > { %v1082_v7 = vpack.c.bf16 %v1081_v5, %v1081_v5 }
 0x76b   : > { %1422 = vmatmul.mubr.msk.bf16.vlgmr.msra.gmra.mrb[16].mxu1 %vm528_vm3, %v1082_v7 }
 0x83e   : > { %v1139_v9 = vpop.f32.mrb[16].mxu1 }
 0x83f   : > { %v1423_v16 = vpop.f32.mrb[17].mxu1  ;;  %v1140_v10 = vadd.f32 %v1139_v9, %v1100_v8 }
 0x840   : > { %v1142_v11 = vpop.f32.mrb[18].mxu1 }
 0x841   : > { %1146 = vst.msk [vmem:[%s409_s22] sm:$0xf] %vm1145_vm6, %v1140_v10  ;;  %v1424_v12 = vpop.f32.mrb[19].mxu1 }
 0x842 PF: > { %s1963_s12 = sld [smem:[#allocation9_spill]]  ;;  %s1964_s30 = smov %s1589_s10 }
 0x843   : > { %s1965_s10 = smov %s1593_s11  ;;  %s1966_s11 = smov %s1730_s24 }
 0x848   : > { %p20_p1 = scmp.ge.s32.totalorder %s1963_s12, 4  }
 0x84a   :  { %22 = sbr.rel (!%p20_p1) target bundleno = 4 (0x4), region = 109 }
 0x851   :  { %1166 = vsyncpa [#allocation4], 1 }
 0x852   :  { %1168 = vsyncpa [#allocation4 + $0x1], 1 }
 0x853   :  { %1169 = vsyncpa [#allocation6], 1 }

</bundles_post_ra>
